<compile_context>
chip_gen: v6e
topology: v6e:2x2x1
jax: 0.10.0
libtpu: 0.0.40
codegen_flags: <defaults>
</compile_context>

<pallas_src>
import jax
import jax.numpy as jnp
from jax.experimental import pallas as pl
from jax.experimental.pallas import tpu as pltpu

IN_DIM = 784          # 28 * 28
LANE = 128            # TPU lane width
SUB_BF16 = 16         # bf16 sublane packing (one vreg holds [16,128] bf16)


def _round_up(n, m):
    return (n + m - 1) // m * m


def _cdiv(a, b):
    return -(-a // b)


def _mlp_kernel(x_ref, w1_ref, w2_ref, w3_ref, o_ref):
    # x_ref:  (TB, K_PAD)      bf16
    # w1_ref: (K_PAD, H1P)     bf16
    # w2_ref: (H1P, H2P)       bf16
    # w3_ref: (H2P, O_PAD)     bf16
    # o_ref:  (TB, O_PAD)      f32
    h = jnp.dot(x_ref[...], w1_ref[...], preferred_element_type=jnp.float32)
    h = jnp.maximum(h, 0.0).astype(jnp.bfloat16)   # ReLU in fp32, re-feed MXU in bf16
    h = jnp.dot(h, w2_ref[...], preferred_element_type=jnp.float32)
    h = jnp.maximum(h, 0.0).astype(jnp.bfloat16)
    o_ref[...] = jnp.dot(h, w3_ref[...], preferred_element_type=jnp.float32)


def prepare_params(w1, w2, w3):
    """One-time prep: PyTorch nn.Linear layout (out,in) -> (in,out), bf16,
    every matmul dim zero-padded to a multiple of 128 (exact: ReLU(0)=0 and
    zero weight rows/cols contribute nothing)."""
    h1, h2, o = w1.shape[0], w2.shape[0], w3.shape[0]
    k_pad = _round_up(IN_DIM, LANE)
    h1p = _round_up(h1, LANE)
    h2p = _round_up(h2, LANE)
    o_pad = _round_up(o, LANE)

    w1p = jnp.zeros((k_pad, h1p), jnp.bfloat16).at[:IN_DIM, :h1].set(
        jnp.asarray(w1, jnp.float32).T.astype(jnp.bfloat16))
    w2p = jnp.zeros((h1p, h2p), jnp.bfloat16).at[:h1, :h2].set(
        jnp.asarray(w2, jnp.float32).T.astype(jnp.bfloat16))
    w3p = jnp.zeros((h2p, o_pad), jnp.bfloat16).at[:h2, :o].set(
        jnp.asarray(w3, jnp.float32).T.astype(jnp.bfloat16))
    return w1p, w2p, w3p, o


def make_dppnet_forward(w1, w2, w3, *, batch_tile=256):
    """Returns a jitted forward(x) closing over prepped (bf16, padded) weights."""
    w1p, w2p, w3p, o_dim = prepare_params(w1, w2, w3)
    k_pad, h1p = w1p.shape
    h2p = w2p.shape[1]
    o_pad = w3p.shape[1]

    @jax.jit
    def forward(x):
        x2 = x.reshape(-1, IN_DIM)
        B = x2.shape[0]
        # Pick grid count first, then the smallest lane/sublane-friendly tile
        # that covers B -> minimal batch padding waste.
        n_b = max(1, _cdiv(B, batch_tile))
        tb = _round_up(_cdiv(B, n_b), SUB_BF16)
        bp = n_b * tb

        # Single fused pad + cast: (B, 784) f32 -> (bp, k_pad) bf16, zero-padded.
        xp = jnp.zeros((bp, k_pad), jnp.bfloat16)
        xp = xp.at[:B, :IN_DIM].set(x2.astype(jnp.bfloat16))

        flops = 2 * bp * (k_pad * h1p + h1p * h2p + h2p * o_pad)
        bytes_accessed = (2 * (xp.size + w1p.size + w2p.size + w3p.size)
                          + bp * o_pad * 4)

        out = pl.pallas_call(
            _mlp_kernel,
            out_shape=jax.ShapeDtypeStruct((bp, o_pad), jnp.float32),
            grid=(n_b,),
            in_specs=[
                pl.BlockSpec((tb, k_pad), lambda i: (i, 0)),    # x tiles stream
                pl.BlockSpec((k_pad, h1p), lambda i: (0, 0)),   # weights stay resident
                pl.BlockSpec((h1p, h2p), lambda i: (0, 0)),
                pl.BlockSpec((h2p, o_pad), lambda i: (0, 0)),
            ],
            out_specs=pl.BlockSpec((tb, o_pad), lambda i: (i, 0)),
            compiler_params=pltpu.CompilerParams(
                dimension_semantics=("parallel",)),
            cost_estimate=pl.CostEstimate(
                flops=flops, transcendentals=0, bytes_accessed=bytes_accessed),
        )(xp, w1p, w2p, w3p)

        return out[:B, :o_dim]

    return forward


def init_params(key, h1, h2, o):
    """Deterministic init mimicking nn.Linear default (uniform +-1/sqrt(fan_in))."""
    k1, k2, k3 = jax.random.split(key, 3)
    w1 = jax.random.uniform(k1, (h1, IN_DIM), jnp.float32,
                            -1.0 / jnp.sqrt(float(IN_DIM)), 1.0 / jnp.sqrt(float(IN_DIM)))
    w2 = jax.random.uniform(k2, (h2, h1), jnp.float32,
                            -1.0 / jnp.sqrt(float(h1)), 1.0 / jnp.sqrt(float(h1)))
    w3 = jax.random.uniform(k3, (o, h2), jnp.float32,
                            -1.0 / jnp.sqrt(float(h2)), 1.0 / jnp.sqrt(float(h2)))
    return w1, w2, w3


if __name__ == "__main__":
    key = jax.random.PRNGKey(0)
    kx, kp = jax.random.split(key)

    h1, h2, o = 32, 32, 16
    batch = 8

    # Input shaped like MNIST images (B, 1, 28, 28); forward flattens to (B, 784).
    x = jax.random.normal(kx, (batch, 1, 28, 28), jnp.float32)
    w1, w2, w3 = init_params(kp, h1, h2, o)

    forward = make_dppnet_forward(w1, w2, w3)
    out = jax.block_until_ready(forward(x))

    # Pure-JAX fp32 reference; kernel uses bf16 MXU operands -> loose tolerance.
    xr = x.reshape(-1, IN_DIM)
    ref = jnp.maximum(xr @ w1.T, 0.0)
    ref = jnp.maximum(ref @ w2.T, 0.0)
    ref = ref @ w3.T

    assert out.shape == (batch, o)
    assert jnp.allclose(out, ref, atol=5e-2, rtol=5e-2), \
        f"max abs err {float(jnp.max(jnp.abs(out - ref)))}"

    print("KERNEL_OK")
</pallas_src>

<mosaic_0001>
module attributes {stable_mosaic.version = 11 : i64} {
  func.func @_mlp_kernel(%arg0: i32, %arg1: memref<16x896xbf16, #tpu.memory_space<vmem>>, %arg2: memref<896x128xbf16, #tpu.memory_space<vmem>>, %arg3: memref<128x128xbf16, #tpu.memory_space<vmem>>, %arg4: memref<128x128xbf16, #tpu.memory_space<vmem>>, %arg5: memref<16x128xf32, #tpu.memory_space<vmem>>) attributes {dimension_semantics = [#tpu.dimension_semantics<parallel>], iteration_bounds = array<i64: 1>, scalar_prefetch = 0 : i64, scratch_operands = 0 : i64, tpu.core_type = #tpu.core_type<tc>, window_params = [{transform_indices = @transform_0, window_bounds = array<i64: 16, 896>}, {pipeline_mode = #tpu.pipeline_mode<synchronous>, transform_indices = @transform_1, window_bounds = array<i64: 896, 128>}, {pipeline_mode = #tpu.pipeline_mode<synchronous>, transform_indices = @transform_2, window_bounds = array<i64: 128, 128>}, {pipeline_mode = #tpu.pipeline_mode<synchronous>, transform_indices = @transform_3, window_bounds = array<i64: 128, 128>}, {transform_indices = @transform_4, window_bounds = array<i64: 16, 128>}]} {
    %c0 = arith.constant 0 : index
    %c0_0 = arith.constant 0 : index
    %0 = vector.load %arg1[%c0, %c0_0] : memref<16x896xbf16, #tpu.memory_space<vmem>>, vector<16x896xbf16>
    %c0_1 = arith.constant 0 : index
    %c0_2 = arith.constant 0 : index
    %1 = vector.load %arg2[%c0_1, %c0_2] : memref<896x128xbf16, #tpu.memory_space<vmem>>, vector<896x128xbf16>
    %cst = arith.constant dense<0.000000e+00> : vector<16x128xf32>
    %2 = tpu.matmul %0, %1, %cst {dimension_numbers = #tpu.dot_dimension_numbers<[1], [0], [0], [1], [0, 0, 1, 1], [], []>} : vector<16x896xbf16>, vector<896x128xbf16>, vector<16x128xf32> -> vector<16x128xf32>
    %cst_3 = arith.constant 0.000000e+00 : f32
    %3 = vector.broadcast %cst_3 : f32 to vector<16x128xf32>
    %4 = arith.maximumf %2, %3 : vector<16x128xf32>
    %5 = arith.truncf %4 : vector<16x128xf32> to vector<16x128xbf16>
    %c0_4 = arith.constant 0 : index
    %c0_5 = arith.constant 0 : index
    %6 = vector.load %arg3[%c0_4, %c0_5] : memref<128x128xbf16, #tpu.memory_space<vmem>>, vector<128x128xbf16>
    %cst_6 = arith.constant dense<0.000000e+00> : vector<16x128xf32>
    %7 = tpu.matmul %5, %6, %cst_6 {dimension_numbers = #tpu.dot_dimension_numbers<[1], [0], [0], [1], [0, 0, 1, 1], [], []>} : vector<16x128xbf16>, vector<128x128xbf16>, vector<16x128xf32> -> vector<16x128xf32>
    %cst_7 = arith.constant 0.000000e+00 : f32
    %8 = vector.broadcast %cst_7 : f32 to vector<16x128xf32>
    %9 = arith.maximumf %7, %8 : vector<16x128xf32>
    %10 = arith.truncf %9 : vector<16x128xf32> to vector<16x128xbf16>
    %c0_8 = arith.constant 0 : index
    %c0_9 = arith.constant 0 : index
    %11 = vector.load %arg4[%c0_8, %c0_9] : memref<128x128xbf16, #tpu.memory_space<vmem>>, vector<128x128xbf16>
    %cst_10 = arith.constant dense<0.000000e+00> : vector<16x128xf32>
    %12 = tpu.matmul %10, %11, %cst_10 {dimension_numbers = #tpu.dot_dimension_numbers<[1], [0], [0], [1], [0, 0, 1, 1], [], []>} : vector<16x128xbf16>, vector<128x128xbf16>, vector<16x128xf32> -> vector<16x128xf32>
    %c0_11 = arith.constant 0 : index
    %c0_12 = arith.constant 0 : index
    %13 = vector.load %arg5[%c0_11, %c0_12] : memref<16x128xf32, #tpu.memory_space<vmem>>, vector<16x128xf32>
    tpu.vector_store %arg5[%c0_11, %c0_12], %12 {strides = array<i32>} : memref<16x128xf32, #tpu.memory_space<vmem>>, vector<16x128xf32>,
    return
  }
  func.func @transform_0(%arg0: i32) -> (i32, i32) {
    %c0_i32 = arith.constant 0 : i32
    %c0_i32_0 = arith.constant 0 : i32
    return %arg0, %c0_i32 : i32, i32
  }
  func.func @transform_1(%arg0: i32) -> (i32, i32) {
    %c0_i32 = arith.constant 0 : i32
    %c0_i32_0 = arith.constant 0 : i32
    %c0_i32_1 = arith.constant 0 : i32
    return %c0_i32, %c0_i32_0 : i32, i32
  }
  func.func @transform_2(%arg0: i32) -> (i32, i32) {
    %c0_i32 = arith.constant 0 : i32
    %c0_i32_0 = arith.constant 0 : i32
    %c0_i32_1 = arith.constant 0 : i32
    return %c0_i32, %c0_i32_0 : i32, i32
  }
  func.func @transform_3(%arg0: i32) -> (i32, i32) {
    %c0_i32 = arith.constant 0 : i32
    %c0_i32_0 = arith.constant 0 : i32
    %c0_i32_1 = arith.constant 0 : i32
    return %c0_i32, %c0_i32_0 : i32, i32
  }
  func.func @transform_4(%arg0: i32) -> (i32, i32) {
    %c0_i32 = arith.constant 0 : i32
    %c0_i32_0 = arith.constant 0 : i32
    return %arg0, %c0_i32 : i32, i32
  }
}

</mosaic_0001>

<bundles_post_ra>
// kernel: forward.1
= control target key start
LH: loop header
LB: loop body
LE: loop exit
PB: predicated region body
PF: predicated region fallthrough
CT: control target
= control target key end

     0   :  { %v1212_v36 = vmov 0.0   ;;  %vm1213_vm0 = vmmov 0   ;;  %s1512_s1 = inlined_call_operand.vmem [shape: bf16[896,128], index: 1, kind: input, shape index: {}]   ;;  %s1513_s0 = inlined_call_operand.vmem [shape: bf16[16,896], index: 0, kind: input, shape index: {}]   ;;  %s1514_s2 = inlined_call_operand.vmem [shape: bf16[128,128], index: 2, kind: input, shape index: {}]   ;;  %s1515_s3 = inlined_call_operand.vmem [shape: bf16[128,128], index: 3, kind: input, shape index: {}]   ;;  %s1516_s4 = inlined_call_operand.vmem [shape: f32[16,128], index: 4, kind: output, shape index: {}]  }
   0x1   :  { %v1130_v0 = vld [vmem:[%s1512_s1 + $0x78] sm:$0xff]   ;;  %v1134_v4 = vld [vmem:[%s1512_s1 + $0x70] sm:$0xff]   ;;  %v1138_v8 = vld [vmem:[%s1512_s1 + $0x68] sm:$0xff]  }
   0x2   :  { %v1131_v1 = vld [vmem:[%s1512_s1 + $0xf8] sm:$0xff]   ;;  %975 = vmatprep.subr.bf16.mxu0 %v1130_v0  ;;  %v1135_v5 = vld [vmem:[%s1512_s1 + $0xf0] sm:$0xff]   ;;  %v1139_v9 = vld [vmem:[%s1512_s1 + $0xe8] sm:$0xff]  }
   0x3   :  { %v1132_v2 = vld [vmem:[%s1512_s1 + $0x38] sm:$0xff]   ;;  %997 = vmatprep.subr.bf16.mxu1 %v1131_v1  ;;  %v1136_v6 = vld [vmem:[%s1512_s1 + $0x30] sm:$0xff]   ;;  %v1140_v10 = vld [vmem:[%s1512_s1 + $0x28] sm:$0xff]  }
   0x4   :  { %v1133_v3 = vld [vmem:[%s1512_s1 + $0xb8] sm:$0xff]   ;;  %976 = vmatpush3.bf16.msra.mxu0 %v1132_v2  ;;  %v1137_v7 = vld [vmem:[%s1512_s1 + $0xb0] sm:$0xff]   ;;  %v1141_v11 = vld [vmem:[%s1512_s1 + $0xa8] sm:$0xff]  }
   0x5   :  { %998 = vmatpush3.bf16.msra.mxu1 %v1133_v3  ;;  %977 = vmatprep.subr.bf16.mxu0 %v1134_v4  ;;  %v1142_v12 = vld [vmem:[%s1512_s1 + $0x60] sm:$0xff]   ;;  %v1146_v16 = vld [vmem:[%s1512_s1 + $0x58] sm:$0xff]   ;;  %v1150_v20 = vld [vmem:[%s1512_s1 + $0x50] sm:$0xff]  }
   0x6   :  { %999 = vmatprep.subr.bf16.mxu1 %v1135_v5  ;;  %v1143_v13 = vld [vmem:[%s1512_s1 + $0xe0] sm:$0xff]   ;;  %v1147_v17 = vld [vmem:[%s1512_s1 + $0xd8] sm:$0xff]   ;;  %v1151_v21 = vld [vmem:[%s1512_s1 + $0xd0] sm:$0xff]  }
   0x7   :  { %v1144_v14 = vld [vmem:[%s1512_s1 + $0x20] sm:$0xff]   ;;  %v1148_v18 = vld [vmem:[%s1512_s1 + $0x18] sm:$0xff]   ;;  %v1152_v22 = vld [vmem:[%s1512_s1 + $0x10] sm:$0xff]  }
   0x8   :  { %978 = vmatpush3.bf16.msra.mxu0 %v1136_v6  ;;  %v1145_v15 = vld [vmem:[%s1512_s1 + $0xa0] sm:$0xff]   ;;  %v1149_v19 = vld [vmem:[%s1512_s1 + $0x98] sm:$0xff]   ;;  %v1153_v23 = vld [vmem:[%s1512_s1 + $0x90] sm:$0xff]  }
   0x9   :  { %1000 = vmatpush3.bf16.msra.mxu1 %v1137_v7  ;;  %979 = vmatprep.subr.bf16.mxu0 %v1138_v8  ;;  %v1154_v24 = vld [vmem:[%s1512_s1 + $0x48] sm:$0xff]   ;;  %v1158_v28 = vld [vmem:[%s1512_s1 + $0x40] sm:$0xff]   ;;  %v1168_v37 = vld [vmem:[%s1512_s1 + $0x178] sm:$0xff]  }
   0xa   :  { %1001 = vmatprep.subr.bf16.mxu1 %v1139_v9  ;;  %v1155_v25 = vld [vmem:[%s1512_s1 + $0xc8] sm:$0xff]   ;;  %v1159_v29 = vld [vmem:[%s1512_s1 + $0xc0] sm:$0xff]   ;;  %v1169_v38 = vld [vmem:[%s1512_s1 + $0x138] sm:$0xff]  }
   0xb   :  { %v1156_v26 = vld [vmem:[%s1512_s1 + $0x8] sm:$0xff]   ;;  %v1160_v30 = vld [vmem:[%s1512_s1] sm:$0xff]   ;;  %v1170_v39 = vld [vmem:[%s1512_s1 + $0x1b8] sm:$0xff]  }
   0xc   :  { %980 = vmatpush3.bf16.msra.mxu0 %v1140_v10  ;;  %v1157_v27 = vld [vmem:[%s1512_s1 + $0x88] sm:$0xff]   ;;  %v1161_v31 = vld [vmem:[%s1512_s1 + $0x80] sm:$0xff]   ;;  %v1171_v40 = vld [vmem:[%s1512_s1 + $0x170] sm:$0xff]  }
   0xd   :  { %1002 = vmatpush3.bf16.msra.mxu1 %v1141_v11  ;;  %981 = vmatprep.subr.bf16.mxu0 %v1142_v12  ;;  %v1162_v32 = vld [vmem:[%s1513_s0] ss:$28 sps:$4 sm:$0xff]   ;;  %v1165_v34 = vld [vmem:[%s1513_s0 + $0x8] ss:$28 sps:$4 sm:$0xff]   ;;  %v1172_v41 = vld [vmem:[%s1512_s1 + $0x130] sm:$0xff]  }
   0xe   :  { %1003 = vmatprep.subr.bf16.mxu1 %v1143_v13  ;;  %v1164_v33 = vld [vmem:[%s1513_s0 + $0x4] ss:$28 sps:$4 sm:$0xff]   ;;  %v1167_v35 = vld [vmem:[%s1513_s0 + $0xc] ss:$28 sps:$4 sm:$0xff]   ;;  %v1173_v42 = vld [vmem:[%s1512_s1 + $0x1b0] sm:$0xff]  }
   0xf   :  { %542 = vmatprep.mubr.bf16.mxu0 %v1164_v33  ;;  %583 = vmatprep.mubr.bf16.mxu1 %v1167_v35  ;;  %v1174_v43 = vld [vmem:[%s1512_s1 + $0x168] sm:$0xff]   ;;  %v1177_v46 = vld [vmem:[%s1512_s1 + $0x160] sm:$0xff]   ;;  %v1180_v49 = vld [vmem:[%s1512_s1 + $0x158] sm:$0xff]  }
  0x10   :  { %982 = vmatpush3.bf16.msra.mxu0 %v1144_v14  ;;  %v1175_v44 = vld [vmem:[%s1512_s1 + $0x128] sm:$0xff]   ;;  %v1178_v47 = vld [vmem:[%s1512_s1 + $0x120] sm:$0xff]   ;;  %v1181_v50 = vld [vmem:[%s1512_s1 + $0x118] sm:$0xff]  }
  0x11   :  { %1004 = vmatpush3.bf16.msra.mxu1 %v1145_v15  ;;  %983 = vmatprep.subr.bf16.mxu0 %v1146_v16  ;;  %v1176_v45 = vld [vmem:[%s1512_s1 + $0x1a8] sm:$0xff]   ;;  %v1179_v48 = vld [vmem:[%s1512_s1 + $0x1a0] sm:$0xff]   ;;  %v1182_v51 = vld [vmem:[%s1512_s1 + $0x198] sm:$0xff]  }
  0x12   :  { %1005 = vmatprep.subr.bf16.mxu1 %v1147_v17  ;;  %v1183_v52 = vld [vmem:[%s1512_s1 + $0x150] sm:$0xff]   ;;  %v1186_v55 = vld [vmem:[%s1512_s1 + $0x148] sm:$0xff]   ;;  %v1189_v58 = vld [vmem:[%s1512_s1 + $0x140] sm:$0xff]  }
  0x13   :  { %v1184_v53 = vld [vmem:[%s1512_s1 + $0x110] sm:$0xff]   ;;  %v1187_v56 = vld [vmem:[%s1512_s1 + $0x108] sm:$0xff]   ;;  %v1190_v60 = vld [vmem:[%s1512_s1 + $0x100] sm:$0xff]  }
  0x14   :  { %984 = vmatpush3.bf16.msra.mxu0 %v1148_v18  ;;  %v1185_v54 = vld [vmem:[%s1512_s1 + $0x190] sm:$0xff]   ;;  %v1188_v57 = vld [vmem:[%s1512_s1 + $0x188] sm:$0xff]   ;;  %v1191_v61 = vld [vmem:[%s1512_s1 + $0x180] sm:$0xff]  }
  0x15   :  { %1006 = vmatpush3.bf16.msra.mxu1 %v1149_v19  ;;  %985 = vmatprep.subr.bf16.mxu0 %v1150_v20  ;;  %v1194_v59 = vld [vmem:[%s1513_s0 + $0x14] ss:$28 sps:$4 sm:$0xff]   ;;  %v1196_v0 = vld [vmem:[%s1514_s2 + $0x38] sm:$0xff]   ;;  %v1198_v2 = vld [vmem:[%s1514_s2 + $0x28] sm:$0xff]  }
  0x16   :  { %1007 = vmatprep.subr.bf16.mxu1 %v1151_v21  ;;  %v1192_v62 = vld [vmem:[%s1513_s0 + $0x10] ss:$28 sps:$4 sm:$0xff]   ;;  %v1195_v63 = vld [vmem:[%s1513_s0 + $0x18] ss:$28 sps:$4 sm:$0xff]   ;;  %v1199_v3 = vld [vmem:[%s1514_s2 + $0x20] sm:$0xff]  }
  0x17   :  { %v1197_v1 = vld [vmem:[%s1514_s2 + $0x30] sm:$0xff]   ;;  %v1200_v4 = vld [vmem:[%s1514_s2 + $0x18] sm:$0xff]   ;;  %v1202_v6 = vld [vmem:[%s1514_s2 + $0x8] sm:$0xff]  }
  0x18   :  { %986 = vmatpush3.bf16.msra.mxu0 %v1152_v22  ;;  %v1201_v5 = vld [vmem:[%s1514_s2 + $0x10] sm:$0xff]   ;;  %v1203_v7 = vld [vmem:[%s1514_s2] sm:$0xff]   ;;  %v1204_v8 = vld [vmem:[%s1515_s3 + $0x38] sm:$0xff]  }
  0x19   :  { %1008 = vmatpush3.bf16.msra.mxu1 %v1153_v23  ;;  %987 = vmatprep.subr.bf16.mxu0 %v1154_v24  ;;  %v1205_v9 = vld [vmem:[%s1515_s3 + $0x30] sm:$0xff]   ;;  %v1206_v10 = vld [vmem:[%s1515_s3 + $0x28] sm:$0xff]   ;;  %v1207_v11 = vld [vmem:[%s1515_s3 + $0x20] sm:$0xff]  }
  0x1a   :  { %1009 = vmatprep.subr.bf16.mxu1 %v1155_v25  ;;  %v1208_v12 = vld [vmem:[%s1515_s3 + $0x18] sm:$0xff]   ;;  %v1209_v13 = vld [vmem:[%s1515_s3 + $0x10] sm:$0xff]  }
  0x1c   :  { %988 = vmatpush3.bf16.msra.mxu0 %v1156_v26 }
  0x1d   :  { %1010 = vmatpush3.bf16.msra.mxu1 %v1157_v27  ;;  %989 = vmatprep.subr.bf16.mxu0 %v1158_v28 }
  0x1e   :  { %1011 = vmatprep.subr.bf16.mxu1 %v1159_v29 }
  0x20   :  { %990 = vmatpush3.bf16.msra.mxu0 %v1160_v30 }
  0x21   :  { %1012 = vmatpush3.bf16.msra.mxu1 %v1161_v31  ;;  %1019 = vmatprep.subr.bf16.mxu0 %v1168_v37 }
  0x22   :  { %1068 = vmatprep.subr.bf16.mxu1 %v1212_v36 }
  0x23   :  { %543 = vmatmul.mubr.bf16.vlgmr.msra.gmra.mxu0 %v1162_v32 }
  0x24   :  { %584 = vmatmul.mubr.bf16.vlgmr.msra.gmra.mxu1 %v1165_v34  ;;  %1020 = vmatpush3.bf16.msra.mxu0 %v1169_v38 }
  0x25   :  { %1084 = vmatprep.mubr.msk.bf16.mxu1 %vm1213_vm0, %v1212_v36  ;;  %1069 = vmatpush3.bf16.msra.mxu1 %v1170_v39 }
  0x26   :  { %1021 = vmatprep.subr.bf16.mxu0 %v1171_v40  ;;  %1070 = vmatprep.subr.bf16.mxu1 %v1212_v36 }
  0x27   :  { %624 = vmatprep.mubr.bf16.mxu0 %v1194_v59 }
  0x28   :  { %1022 = vmatpush3.bf16.msra.mxu0 %v1172_v41 }
  0x29   :  { %1071 = vmatpush3.bf16.msra.mxu1 %v1173_v42  ;;  %1023 = vmatprep.subr.bf16.mxu0 %v1174_v43 }
  0x2a   :  { %1072 = vmatprep.subr.bf16.mxu1 %v1212_v36 }
  0x2c   :  { %1024 = vmatpush3.bf16.msra.mxu0 %v1175_v44 }
  0x2d   :  { %1073 = vmatpush3.bf16.msra.mxu1 %v1176_v45  ;;  %1025 = vmatprep.subr.bf16.mxu0 %v1177_v46  ;;  %v1210_v46 = vld [vmem:[%s1515_s3 + $0x8] sm:$0xff]  }
  0x2e   :  { %1074 = vmatprep.subr.bf16.mxu1 %v1212_v36 }
  0x30   :  { %1026 = vmatpush3.bf16.msra.mxu0 %v1178_v47  ;;  %v1211_v47 = vld [vmem:[%s1515_s3] sm:$0xff]  }
  0x31   :  { %1075 = vmatpush3.bf16.msra.mxu1 %v1179_v48  ;;  %1027 = vmatprep.subr.bf16.mxu0 %v1180_v49 }
  0x32   :  { %1076 = vmatprep.subr.bf16.mxu1 %v1212_v36 }
  0x34   :  { %1028 = vmatpush3.bf16.msra.mxu0 %v1181_v50 }
  0x35   :  { %1077 = vmatpush3.bf16.msra.mxu1 %v1182_v51  ;;  %1029 = vmatprep.subr.bf16.mxu0 %v1183_v52 }
  0x36   :  { %1078 = vmatprep.subr.bf16.mxu1 %v1212_v36 }
  0x38   :  { %1030 = vmatpush3.bf16.msra.mxu0 %v1184_v53 }
  0x39   :  { %1079 = vmatpush3.bf16.msra.mxu1 %v1185_v54  ;;  %1031 = vmatprep.subr.bf16.mxu0 %v1186_v55 }
  0x3a   :  { %1080 = vmatprep.subr.bf16.mxu1 %v1212_v36 }
  0x3c   :  { %1032 = vmatpush3.bf16.msra.mxu0 %v1187_v56 }
  0x3d   :  { %1081 = vmatpush3.bf16.msra.mxu1 %v1188_v57  ;;  %1033 = vmatprep.subr.bf16.mxu0 %v1189_v58 }
  0x3e   :  { %1082 = vmatprep.subr.bf16.mxu1 %v1212_v36 }
  0x40   :  { %1034 = vmatpush3.bf16.msra.mxu0 %v1190_v60 }
  0x41   :  { %1083 = vmatpush3.bf16.msra.mxu1 %v1191_v61  ;;  %1088 = vmatprep.subr.bf16.mxu0 %v1212_v36 }
  0x42   :  { %1108 = vmatprep.subr.bf16.mxu1 %v1212_v36 }
  0x43   :  { %625 = vmatmul.mubr.bf16.vlgmr.msra.gmra.mxu0 %v1192_v62 }
  0x44   :  { %1085 = vmatmul.mubr.bf16.vlgmr.msra.gmra.mxu1 %v1195_v63  ;;  %1104 = vmatprep.mubr.msk.bf16.mxu0 %vm1213_vm0, %v1212_v36 }
  0x45   :  { %1124 = vmatprep.mubr.msk.bf16.mxu1 %vm1213_vm0, %v1212_v36  ;;  %1089 = vmatpush3.bf16.msra.mxu0 %v1196_v0 }
  0x46   :  { %1090 = vmatprep.subr.bf16.mxu0 %v1212_v36  ;;  %1109 = vmatpush3.bf16.msra.mxu1 %v1204_v8 }
  0x47   :  { %1110 = vmatprep.subr.bf16.mxu1 %v1212_v36 }
  0x49   :  { %1091 = vmatpush3.bf16.msra.mxu0 %v1197_v1 }
  0x4a   :  { %1092 = vmatprep.subr.bf16.mxu0 %v1212_v36  ;;  %1111 = vmatpush3.bf16.msra.mxu1 %v1205_v9 }
  0x4b   :  { %1112 = vmatprep.subr.bf16.mxu1 %v1212_v36 }
  0x4d   :  { %1093 = vmatpush3.bf16.msra.mxu0 %v1198_v2 }
  0x4e   :  { %1094 = vmatprep.subr.bf16.mxu0 %v1212_v36  ;;  %1113 = vmatpush3.bf16.msra.mxu1 %v1206_v10 }
  0x4f   :  { %1114 = vmatprep.subr.bf16.mxu1 %v1212_v36 }
  0x51   :  { %1095 = vmatpush3.bf16.msra.mxu0 %v1199_v3 }
  0x52   :  { %1096 = vmatprep.subr.bf16.mxu0 %v1212_v36  ;;  %1115 = vmatpush3.bf16.msra.mxu1 %v1207_v11 }
  0x53   :  { %1116 = vmatprep.subr.bf16.mxu1 %v1212_v36 }
  0x55   :  { %1097 = vmatpush3.bf16.msra.mxu0 %v1200_v4 }
  0x56   :  { %1098 = vmatprep.subr.bf16.mxu0 %v1212_v36  ;;  %1117 = vmatpush3.bf16.msra.mxu1 %v1208_v12 }
  0x57   :  { %1118 = vmatprep.subr.bf16.mxu1 %v1212_v36 }
  0x59   :  { %1099 = vmatpush3.bf16.msra.mxu0 %v1201_v5 }
  0x5a   :  { %1100 = vmatprep.subr.bf16.mxu0 %v1212_v36  ;;  %1119 = vmatpush3.bf16.msra.mxu1 %v1209_v13 }
  0x5b   :  { %1120 = vmatprep.subr.bf16.mxu1 %v1212_v36 }
  0x5d   :  { %1101 = vmatpush3.bf16.msra.mxu0 %v1202_v6 }
  0x5e   :  { %1102 = vmatprep.subr.bf16.mxu0 %v1212_v36  ;;  %1121 = vmatpush3.bf16.msra.mxu1 %v1210_v46 }
  0x5f   :  { %1122 = vmatprep.subr.bf16.mxu1 %v1212_v36 }
  0x61   :  { %1103 = vmatpush3.bf16.msra.mxu0 %v1203_v7 }
  0x62   :  { %1123 = vmatpush3.bf16.msra.mxu1 %v1211_v47 }
  0xe3   :  { %v991_v14 = vpop.f32.mrf.mxu0 }
  0xe4   :  { %v1013_v15 = vpop.f32.mrf.mxu1 }
  0xe5   :  { %v992_v16 = vpop.f32.mrf.mxu0 }
  0xe6   :  { %v1014_v17 = vpop.f32.mrf.mxu1  ;;  %v993_v21 = vadd.f32 %v992_v16, %v991_v14 }
  0xe7   :  { %v994_v18 = vpop.f32.mrf.mxu0  ;;  %v1015_v22 = vadd.f32 %v1014_v17, %v1013_v15 }
  0xe8   :  { %v1016_v19 = vpop.f32.mrf.mxu1 }
  0xe9   :  { %v995_v20 = vpop.f32.mrf.mxu0  ;;  %v586_v27 = vadd.f32 %v1015_v22, %v993_v21 }
  0xea   :  { %v1017_v23 = vpop.f32.mrf.mxu1  ;;  %v996_v28 = vadd.f32 %v995_v20, %v994_v18 }
  0xeb   :  { %v1018_v29 = vadd.f32 %v1017_v23, %v1016_v19 }
  0xed   :  { %v589_v37 = vadd.f32 %v1018_v29, %v996_v28 }
 0x103   :  { %v1035_v24 = vpop.f32.mrf.mxu0 }
 0x104   :  { %v667_v25 = vpop.f32.mrf.mxu1 }
 0x105   :  { %v1036_v26 = vpop.f32.mrf.mxu0 }
 0x106   :  { %v1037_v30 = vadd.f32 %v1036_v26, %v1035_v24  ;;  %v1086_v31 = vpop.f32.mrf.mxu1 }
 0x107   :  { %v1038_v32 = vpop.f32.mrf.mxu0 }
 0x108   :  { %v627_v33 = vadd.f32 %v1037_v30, %v586_v27  ;;  %v670_v34 = vpop.f32.mrf.mxu1 }
 0x109   :  { %v1039_v35 = vpop.f32.mrf.mxu0 }
 0x10a   :  { %v1040_v38 = vadd.f32 %v1039_v35, %v1038_v32  ;;  %v1087_v39 = vpop.f32.mrf.mxu1  ;;  %v668_v40 = vadd.f32 %v667_v25, %v627_v33 }
 0x10c   :  { %v630_v41 = vadd.f32 %v1040_v38, %v589_v37  ;;  %v674_v43 = vmax.f32 %v668_v40, 0.0 }
 0x10e   :  { %v671_v42 = vadd.f32 %v670_v34, %v630_v41 }
 0x110   :  { %v675_v44 = vmax.f32 %v671_v42, 0.0 }
 0x112   :  { %v676_v45 = vpack.c.bf16 %v675_v44, %v674_v43 }
 0x114   :  { %1105 = vmatmul.mubr.bf16.vlgmr.msra.gmra.mxu0 %v676_v45 }
 0x1d4   :  { %v775_v48 = vpop.f32.mrf.mxu0 }
 0x1d5   :  { %v782_v51 = vmax.f32 %v775_v48, 0.0 }
 0x1d6   :  { %v1106_v49 = vpop.f32.mrf.mxu0 }
 0x1d8   :  { %v778_v50 = vpop.f32.mrf.mxu0 }
 0x1d9   :  { %v783_v52 = vmax.f32 %v778_v50, 0.0 }
 0x1da   :  { %v1107_v53 = vpop.f32.mrf.mxu0 }
 0x1db   :  { %v784_v54 = vpack.c.bf16 %v783_v52, %v782_v51 }
 0x1dd   :  { %1125 = vmatmul.mubr.bf16.vlgmr.msra.gmra.mxu1 %v784_v54 }
 0x29d   :  { %v883_v55 = vpop.f32.mrf.mxu1 }
 0x29e   :  { %890 = vst [vmem:[%s1516_s4] sm:$0xff] %v883_v55 }
 0x29f   :  { %v1126_v56 = vpop.f32.mrf.mxu1 }
 0x2a1   :  { %v886_v36 = vpop.f32.mrf.mxu1 }
 0x2a2   :  { %891 = vst [vmem:[%s1516_s4 + $0x8] sm:$0xff] %v886_v36 }
 0x2a3   :  { %v1127_v57 = vpop.f32.mrf.mxu1 }

</bundles_post_ra>
